<compile_context>
chip_gen: v6e
topology: v6e:2x2x1
jax: 0.10.0
libtpu: 0.0.40
codegen_flags: <defaults>
</compile_context>

<pallas_src>
import functools

import jax
import jax.numpy as jnp
from jax import lax
from jax.experimental import pallas as pl
from jax.experimental.pallas import tpu as pltpu


def _round_up(x, m):
    return -(-x // m) * m


def _make_mlp_kernel(tb: int, chunk: int):
    """Build the kernel for one [tb, in_dim] batch tile.

    The tile is processed in `chunk`-lane sub-chunks (chunk % 128 == 0,
    tb % chunk == 0) so intermediates stay vreg-resident for large tb.
    """
    n_chunks = tb // chunk

    def kernel(x_ref, w1_ref, b1_ref, w2_ref, b2_ref, w3_ref, b3_ref, o_ref):
        def body(c, carry):
            i = pl.multiple_of(c * chunk, chunk)
            # Natural-layout [chunk, in] slice of x; bf16 cast in-kernel.
            xc = x_ref[pl.ds(i, chunk), :].astype(jnp.bfloat16)

            # Layer 1: contract in_dim of w1 [hidden, in] against in_dim of
            # xc [chunk, in] -> [hidden, chunk] (batch on the lane axis),
            # bf16 operands, f32 accumulate (MXU).
            h1 = lax.dot_general(
                w1_ref[...], xc,
                dimension_numbers=(((1,), (1,)), ((), ())),
                preferred_element_type=jnp.float32)
            h1 = jnp.maximum(h1 + b1_ref[...], 0.0)      # f32 bias + ReLU (VPU)
            # Dropout(0.3): identity in eval mode.

            # Layer 2: [h2, hidden] @ [hidden, chunk] -> [h2, chunk] (MXU).
            h2 = jnp.dot(w2_ref[...], h1.astype(jnp.bfloat16),
                         preferred_element_type=jnp.float32)
            h2 = jnp.maximum(h2 + b2_ref[...], 0.0)
            # Dropout(0.2): identity in eval mode.

            # Layer 3 (output dim = 1): VPU multiply + sublane (XLU) reduce
            # instead of a degenerate N=1 MXU matmul. Lane-dense store.
            out = jnp.sum(h2 * w3_ref[...], axis=0, keepdims=True) + b3_ref[...]
            o_ref[:, pl.ds(i, chunk)] = out.astype(o_ref.dtype)
            return carry

        lax.fori_loop(0, n_chunks, body, 0, unroll=True)

    return kernel


def _pick_tiling(batch: int):
    """Pick (tb, chunk).

    Single-TC v5e/v6e: tb large enough that grid == 1 (per-step overhead is
    the binding cost). Dual-TC v7x: tb ~ ceil(B/2) so the "parallel" grid axis
    shards across both TensorCores. chunk (<=512 lanes) bounds vreg pressure.
    """
    kind = ""
    try:
        kind = jax.devices()[0].device_kind.lower()
    except Exception:
        pass
    n_tc = 2 if "v7" in kind else 1

    chunk = min(512, max(128, _round_up(batch, 128)))
    tb = _round_up(max(1, -(-batch // n_tc)), chunk)
    tb = min(tb, 4 * chunk)          # cap tile; chunking already bounds vregs
    return tb, chunk


@functools.partial(jax.jit, static_argnames=("tb", "chunk"))
def _forward_impl(x, w1, b1, w2, b2, w3, b3, *, tb, chunk):
    batch, in_dim = x.shape
    hidden = w1.shape[0]            # w1: [hidden, in]   (nn.Linear layout)
    h2dim = w2.shape[0]             # w2: [h2, hidden]
    n_tiles = pl.cdiv(batch, tb)

    # bf16 matmul operands (tiny, cast once inside the same jit); f32 rest.
    w1_bf = w1.astype(jnp.bfloat16)
    w2_bf = w2.astype(jnp.bfloat16)
    b1c = b1.reshape(hidden, 1).astype(jnp.float32)
    b2c = b2.reshape(h2dim, 1).astype(jnp.float32)
    w3c = w3.reshape(h2dim, 1).astype(jnp.float32)
    b3c = b3.reshape(1, 1).astype(jnp.float32)

    # Weights/biases: constant index_map -> resident in VMEM across the grid.
    resident = lambda arr: pl.BlockSpec(arr.shape, lambda i: (0,) * arr.ndim)

    flops = 2 * batch * (in_dim * hidden + hidden * h2dim + h2dim)
    bytes_accessed = (x.size * x.dtype.itemsize + batch * 4
                      + (w1_bf.size + w2_bf.size) * 2
                      + (b1c.size + b2c.size + w3c.size + b3c.size) * 4)

    out = pl.pallas_call(
        _make_mlp_kernel(tb, chunk),
        out_shape=jax.ShapeDtypeStruct((1, batch), jnp.float32),
        grid=(n_tiles,),
        in_specs=[
            # x tile in natural [tb, in_dim] layout; ragged last tile is
            # handled by Pallas (OOB reads -> garbage columns, dropped below).
            pl.BlockSpec((tb, in_dim), lambda i: (i, 0)),
            resident(w1_bf), resident(b1c),
            resident(w2_bf), resident(b2c),
            resident(w3c), resident(b3c),
        ],
        out_specs=pl.BlockSpec((1, tb), lambda i: (0, i)),   # lane-dense output
        compiler_params=pltpu.CompilerParams(
            dimension_semantics=("parallel",)),               # megacore on v7x
        cost_estimate=pl.CostEstimate(
            flops=flops, transcendentals=0, bytes_accessed=bytes_accessed),
    )(x, w1_bf, b1c, w2_bf, b2c, w3c, b3c)

    # Back to the module's [B, 1] orientation inside the same jit (no extra
    # dispatch); OOB batch lanes were never written to HBM.
    return out.T


def face_classifier_forward(x, params, *, tb=None, chunk=None):
    """x: [B, input_dim] f32, params in PyTorch nn.Linear layout.

    Returns [B, 1] f32 logits (FaceClassifierNN.forward in eval mode).
    tb must be a multiple of chunk; chunk a multiple of 128.
    """
    if tb is None or chunk is None:
        auto_tb, auto_chunk = _pick_tiling(x.shape[0])
        tb = tb if tb is not None else auto_tb
        chunk = chunk if chunk is not None else auto_chunk
    assert chunk % 128 == 0, "chunk must be a multiple of 128 lanes"
    assert tb % chunk == 0, "tb must be a multiple of chunk"
    return _forward_impl(x, params["w1"], params["b1"], params["w2"],
                         params["b2"], params["w3"], params["b3"],
                         tb=tb, chunk=chunk)


def init_params(key, input_dim, hidden_dim):
    """Deterministic synthetic init; same layout/init as the nn.Linear layers."""
    h2 = hidden_dim // 2
    ks = jax.random.split(key, 6)

    def lin(kw, kb, fan_in, fan_out):
        bound = 1.0 / jnp.sqrt(fan_in)
        w = jax.random.uniform(kw, (fan_out, fan_in), jnp.float32, -bound, bound)
        b = jax.random.uniform(kb, (fan_out,), jnp.float32, -bound, bound)
        return w, b

    w1, b1 = lin(ks[0], ks[1], input_dim, hidden_dim)
    w2, b2 = lin(ks[2], ks[3], hidden_dim, h2)
    w3, b3 = lin(ks[4], ks[5], h2, 1)
    return dict(w1=w1, b1=b1, w2=w2, b2=b2, w3=w3, b3=b3)


if __name__ == "__main__":
    key = jax.random.PRNGKey(0)
    k_x, k_p = jax.random.split(key)

    # Small shapes consistent with the module; batch=1000 exercises the ragged
    # last tile, the multi-chunk inner loop, and (on v7x) a 2-step parallel grid.
    batch, input_dim, hidden_dim = 1000, 32, 32
    x = jax.random.normal(k_x, (batch, input_dim), jnp.float32)
    params = init_params(k_p, input_dim, hidden_dim)

    out = jax.block_until_ready(face_classifier_forward(x, params))

    # Plain-JAX reference with identical numerics (bf16 matmul operands, f32
    # accumulation, eval-mode dropout = identity), same batch-on-lane math.
    w1, b1, w2, b2, w3, b3 = (params[k] for k in ("w1", "b1", "w2", "b2", "w3", "b3"))
    xT_bf = x.T.astype(jnp.bfloat16)
    r1 = jnp.maximum(
        jnp.dot(w1.astype(jnp.bfloat16), xT_bf, preferred_element_type=jnp.float32)
        + b1[:, None], 0.0)
    r2 = jnp.maximum(
        jnp.dot(w2.astype(jnp.bfloat16), r1.astype(jnp.bfloat16),
                preferred_element_type=jnp.float32) + b2[:, None], 0.0)
    ref = (jnp.sum(r2 * w3.reshape(-1, 1), axis=0, keepdims=True)
           + b3.reshape(1, 1)).T

    assert out.shape == (batch, 1)
    assert jnp.allclose(out, ref, atol=1e-4, rtol=1e-4)

    print("KERNEL_OK")
</pallas_src>

<mosaic_0001>
module attributes {stable_mosaic.version = 11 : i64} {
  func.func @kernel(%arg0: i32, %arg1: memref<1024x32xf32, #tpu.memory_space<vmem>>, %arg2: memref<32x32xbf16, #tpu.memory_space<vmem>>, %arg3: memref<32x1xf32, #tpu.memory_space<vmem>>, %arg4: memref<16x32xbf16, #tpu.memory_space<vmem>>, %arg5: memref<16x1xf32, #tpu.memory_space<vmem>>, %arg6: memref<16x1xf32, #tpu.memory_space<vmem>>, %arg7: memref<1x1xf32, #tpu.memory_space<vmem>>, %arg8: memref<1x1024xf32, #tpu.memory_space<vmem>>) attributes {dimension_semantics = [#tpu.dimension_semantics<parallel>], iteration_bounds = array<i64: 1>, scalar_prefetch = 0 : i64, scratch_operands = 0 : i64, tpu.core_type = #tpu.core_type<tc>, window_params = [{transform_indices = @transform_0, window_bounds = array<i64: 1024, 32>}, {pipeline_mode = #tpu.pipeline_mode<synchronous>, transform_indices = @transform_1, window_bounds = array<i64: 32, 32>}, {pipeline_mode = #tpu.pipeline_mode<synchronous>, transform_indices = @transform_2, window_bounds = array<i64: 32, 1>}, {pipeline_mode = #tpu.pipeline_mode<synchronous>, transform_indices = @transform_3, window_bounds = array<i64: 16, 32>}, {pipeline_mode = #tpu.pipeline_mode<synchronous>, transform_indices = @transform_4, window_bounds = array<i64: 16, 1>}, {pipeline_mode = #tpu.pipeline_mode<synchronous>, transform_indices = @transform_5, window_bounds = array<i64: 16, 1>}, {pipeline_mode = #tpu.pipeline_mode<synchronous>, transform_indices = @transform_6, window_bounds = array<i64: 1, 1>}, {transform_indices = @transform_7, window_bounds = array<i64: 1, 1024>}]} {
    %c0_i32 = arith.constant 0 : i32
    %c512_i32 = arith.constant 512 : i32
    %0 = arith.muli %c0_i32, %c512_i32 : i32
    %1 = tpu.assume_multiple %0, 512 : i32
    %2 = arith.index_cast %1 : i32 to index
    %c0 = arith.constant 0 : index
    %3 = vector.load %arg1[%2, %c0] : memref<1024x32xf32, #tpu.memory_space<vmem>>, vector<512x32xf32>
    %4 = arith.truncf %3 : vector<512x32xf32> to vector<512x32xbf16>
    %c0_0 = arith.constant 0 : index
    %c0_1 = arith.constant 0 : index
    %5 = vector.load %arg2[%c0_0, %c0_1] : memref<32x32xbf16, #tpu.memory_space<vmem>>, vector<32x32xbf16>
    %cst = arith.constant dense<0.000000e+00> : vector<32x512xf32>
    %6 = tpu.matmul %5, %4, %cst {dimension_numbers = #tpu.dot_dimension_numbers<[1], [1], [0], [0], [0, 0, 1, 0], [], []>} : vector<32x32xbf16>, vector<512x32xbf16>, vector<32x512xf32> -> vector<32x512xf32>
    %c0_2 = arith.constant 0 : index
    %c0_3 = arith.constant 0 : index
    %7 = vector.load %arg3[%c0_2, %c0_3] : memref<32x1xf32, #tpu.memory_space<vmem>>, vector<32x1xf32>
    %8 = vector.broadcast %7 : vector<32x1xf32> to vector<32x512xf32>
    %9 = arith.addf %6, %8 : vector<32x512xf32>
    %cst_4 = arith.constant 0.000000e+00 : f32
    %10 = vector.broadcast %cst_4 : f32 to vector<32x512xf32>
    %11 = arith.maximumf %9, %10 : vector<32x512xf32>
    %c0_5 = arith.constant 0 : index
    %c0_6 = arith.constant 0 : index
    %12 = vector.load %arg4[%c0_5, %c0_6] : memref<16x32xbf16, #tpu.memory_space<vmem>>, vector<16x32xbf16>
    %13 = arith.truncf %11 : vector<32x512xf32> to vector<32x512xbf16>
    %cst_7 = arith.constant dense<0.000000e+00> : vector<16x512xf32>
    %14 = tpu.matmul %12, %13, %cst_7 {dimension_numbers = #tpu.dot_dimension_numbers<[1], [0], [0], [1], [0, 0, 1, 1], [], []>} : vector<16x32xbf16>, vector<32x512xbf16>, vector<16x512xf32> -> vector<16x512xf32>
    %c0_8 = arith.constant 0 : index
    %c0_9 = arith.constant 0 : index
    %15 = vector.load %arg5[%c0_8, %c0_9] : memref<16x1xf32, #tpu.memory_space<vmem>>, vector<16x1xf32>
    %16 = vector.broadcast %15 : vector<16x1xf32> to vector<16x512xf32>
    %17 = arith.addf %14, %16 : vector<16x512xf32>
    %cst_10 = arith.constant 0.000000e+00 : f32
    %18 = vector.broadcast %cst_10 : f32 to vector<16x512xf32>
    %19 = arith.maximumf %17, %18 : vector<16x512xf32>
    %c0_11 = arith.constant 0 : index
    %c0_12 = arith.constant 0 : index
    %20 = vector.load %arg6[%c0_11, %c0_12] : memref<16x1xf32, #tpu.memory_space<vmem>>, vector<16x1xf32>
    %21 = vector.broadcast %20 : vector<16x1xf32> to vector<16x512xf32>
    %22 = arith.mulf %19, %21 : vector<16x512xf32>
    %cst_13 = arith.constant dense<0.000000e+00> : vector<512xf32>
    %23 = vector.multi_reduction <add>, %22, %cst_13 [0] : vector<16x512xf32> to vector<512xf32>
    %24 = vector.shape_cast %23 : vector<512xf32> to vector<1x512xf32>
    %c0_14 = arith.constant 0 : index
    %c0_15 = arith.constant 0 : index
    %25 = vector.load %arg7[%c0_14, %c0_15] : memref<1x1xf32, #tpu.memory_space<vmem>>, vector<1x1xf32>
    %26 = vector.broadcast %25 : vector<1x1xf32> to vector<1x512xf32>
    %27 = arith.addf %24, %26 : vector<1x512xf32>
    %c0_16 = arith.constant 0 : index
    %28 = arith.index_cast %1 : i32 to index
    %29 = vector.load %arg8[%c0_16, %28] : memref<1x1024xf32, #tpu.memory_space<vmem>>, vector<1x512xf32>
    tpu.vector_store %arg8[%c0_16, %28], %27 {strides = array<i32>} : memref<1x1024xf32, #tpu.memory_space<vmem>>, vector<1x512xf32>,
    %c1_i32 = arith.constant 1 : i32
    %c512_i32_17 = arith.constant 512 : i32
    %30 = arith.muli %c1_i32, %c512_i32_17 : i32
    %31 = tpu.assume_multiple %30, 512 : i32
    %32 = arith.index_cast %31 : i32 to index
    %c0_18 = arith.constant 0 : index
    %33 = vector.load %arg1[%32, %c0_18] : memref<1024x32xf32, #tpu.memory_space<vmem>>, vector<512x32xf32>
    %34 = arith.truncf %33 : vector<512x32xf32> to vector<512x32xbf16>
    %c0_19 = arith.constant 0 : index
    %c0_20 = arith.constant 0 : index
    %35 = vector.load %arg2[%c0_19, %c0_20] : memref<32x32xbf16, #tpu.memory_space<vmem>>, vector<32x32xbf16>
    %cst_21 = arith.constant dense<0.000000e+00> : vector<32x512xf32>
    %36 = tpu.matmul %35, %34, %cst_21 {dimension_numbers = #tpu.dot_dimension_numbers<[1], [1], [0], [0], [0, 0, 1, 0], [], []>} : vector<32x32xbf16>, vector<512x32xbf16>, vector<32x512xf32> -> vector<32x512xf32>
    %c0_22 = arith.constant 0 : index
    %c0_23 = arith.constant 0 : index
    %37 = vector.load %arg3[%c0_22, %c0_23] : memref<32x1xf32, #tpu.memory_space<vmem>>, vector<32x1xf32>
    %38 = vector.broadcast %37 : vector<32x1xf32> to vector<32x512xf32>
    %39 = arith.addf %36, %38 : vector<32x512xf32>
    %cst_24 = arith.constant 0.000000e+00 : f32
    %40 = vector.broadcast %cst_24 : f32 to vector<32x512xf32>
    %41 = arith.maximumf %39, %40 : vector<32x512xf32>
    %c0_25 = arith.constant 0 : index
    %c0_26 = arith.constant 0 : index
    %42 = vector.load %arg4[%c0_25, %c0_26] : memref<16x32xbf16, #tpu.memory_space<vmem>>, vector<16x32xbf16>
    %43 = arith.truncf %41 : vector<32x512xf32> to vector<32x512xbf16>
    %cst_27 = arith.constant dense<0.000000e+00> : vector<16x512xf32>
    %44 = tpu.matmul %42, %43, %cst_27 {dimension_numbers = #tpu.dot_dimension_numbers<[1], [0], [0], [1], [0, 0, 1, 1], [], []>} : vector<16x32xbf16>, vector<32x512xbf16>, vector<16x512xf32> -> vector<16x512xf32>
    %c0_28 = arith.constant 0 : index
    %c0_29 = arith.constant 0 : index
    %45 = vector.load %arg5[%c0_28, %c0_29] : memref<16x1xf32, #tpu.memory_space<vmem>>, vector<16x1xf32>
    %46 = vector.broadcast %45 : vector<16x1xf32> to vector<16x512xf32>
    %47 = arith.addf %44, %46 : vector<16x512xf32>
    %cst_30 = arith.constant 0.000000e+00 : f32
    %48 = vector.broadcast %cst_30 : f32 to vector<16x512xf32>
    %49 = arith.maximumf %47, %48 : vector<16x512xf32>
    %c0_31 = arith.constant 0 : index
    %c0_32 = arith.constant 0 : index
    %50 = vector.load %arg6[%c0_31, %c0_32] : memref<16x1xf32, #tpu.memory_space<vmem>>, vector<16x1xf32>
    %51 = vector.broadcast %50 : vector<16x1xf32> to vector<16x512xf32>
    %52 = arith.mulf %49, %51 : vector<16x512xf32>
    %cst_33 = arith.constant dense<0.000000e+00> : vector<512xf32>
    %53 = vector.multi_reduction <add>, %52, %cst_33 [0] : vector<16x512xf32> to vector<512xf32>
    %54 = vector.shape_cast %53 : vector<512xf32> to vector<1x512xf32>
    %c0_34 = arith.constant 0 : index
    %c0_35 = arith.constant 0 : index
    %55 = vector.load %arg7[%c0_34, %c0_35] : memref<1x1xf32, #tpu.memory_space<vmem>>, vector<1x1xf32>
    %56 = vector.broadcast %55 : vector<1x1xf32> to vector<1x512xf32>
    %57 = arith.addf %54, %56 : vector<1x512xf32>
    %c0_36 = arith.constant 0 : index
    %58 = arith.index_cast %31 : i32 to index
    %59 = vector.load %arg8[%c0_36, %58] : memref<1x1024xf32, #tpu.memory_space<vmem>>, vector<1x512xf32>
    tpu.vector_store %arg8[%c0_36, %58], %57 {strides = array<i32>} : memref<1x1024xf32, #tpu.memory_space<vmem>>, vector<1x512xf32>,
    %c2_i32 = arith.constant 2 : i32
    return
  }
  func.func @transform_0(%arg0: i32) -> (i32, i32) {
    %c0_i32 = arith.constant 0 : i32
    %c0_i32_0 = arith.constant 0 : i32
    return %arg0, %c0_i32 : i32, i32
  }
  func.func @transform_1(%arg0: i32) -> (i32, i32) {
    %c0_i32 = arith.constant 0 : i32
    %c0_i32_0 = arith.constant 0 : i32
    %c0_i32_1 = arith.constant 0 : i32
    return %c0_i32, %c0_i32_0 : i32, i32
  }
  func.func @transform_2(%arg0: i32) -> (i32, i32) {
    %c0_i32 = arith.constant 0 : i32
    %c0_i32_0 = arith.constant 0 : i32
    %c0_i32_1 = arith.constant 0 : i32
    return %c0_i32, %c0_i32_0 : i32, i32
  }
  func.func @transform_3(%arg0: i32) -> (i32, i32) {
    %c0_i32 = arith.constant 0 : i32
    %c0_i32_0 = arith.constant 0 : i32
    %c0_i32_1 = arith.constant 0 : i32
    return %c0_i32, %c0_i32_0 : i32, i32
  }
  func.func @transform_4(%arg0: i32) -> (i32, i32) {
    %c0_i32 = arith.constant 0 : i32
    %c0_i32_0 = arith.constant 0 : i32
    %c0_i32_1 = arith.constant 0 : i32
    return %c0_i32, %c0_i32_0 : i32, i32
  }
  func.func @transform_5(%arg0: i32) -> (i32, i32) {
    %c0_i32 = arith.constant 0 : i32
    %c0_i32_0 = arith.constant 0 : i32
    %c0_i32_1 = arith.constant 0 : i32
    return %c0_i32, %c0_i32_0 : i32, i32
  }
  func.func @transform_6(%arg0: i32) -> (i32, i32) {
    %c0_i32 = arith.constant 0 : i32
    %c0_i32_0 = arith.constant 0 : i32
    %c0_i32_1 = arith.constant 0 : i32
    return %c0_i32, %c0_i32_0 : i32, i32
  }
  func.func @transform_7(%arg0: i32) -> (i32, i32) {
    %c0_i32 = arith.constant 0 : i32
    %c0_i32_0 = arith.constant 0 : i32
    return %c0_i32, %arg0 : i32, i32
  }
}

</mosaic_0001>

<bundles_post_ra>
// kernel: _forward_impl.1
= control target key start
LH: loop header
LB: loop body
LE: loop exit
PB: predicated region body
PF: predicated region fallthrough
CT: control target
= control target key end

     0   :  { %s2069_s0 = inlined_call_operand.vmem [shape: f32[1000,32], index: 0, kind: input, shape index: {}]   ;;  %s2070_s1 = inlined_call_operand.vmem [shape: bf16[32,32], index: 1, kind: input, shape index: {}]   ;;  %s2071_s2 = inlined_call_operand.vmem [shape: f32[32,1], index: 2, kind: input, shape index: {}]   ;;  %s2072_s3 = inlined_call_operand.vmem [shape: bf16[16,32], index: 3, kind: input, shape index: {}]   ;;  %s2073_s4 = inlined_call_operand.vmem [shape: f32[16,1], index: 4, kind: input, shape index: {}]   ;;  %s2074_s5 = inlined_call_operand.vmem [shape: f32[16,1], index: 5, kind: input, shape index: {}]   ;;  %s2075_s6 = inlined_call_operand.<no memory space> [shape: f32[1,1], index: 6, kind: input, shape index: {}]   ;;  %s2076_s7 = inlined_call_operand.hbm [shape: f32[1,1000], index: 7, kind: output, shape index: {}]  }
   0x1   :  { %v12_v0 = vstv %s2075_s6 }
   0x2   :  { %13 = vst [vmem:[#allocation2] sm:$0x1] %v12_v0 }
   0x3   :  { %v60_v1 = vld [vmem:[%s2069_s0 + $0xf0] sm:$0xff]  ;;  %v61_v2 = vld [vmem:[%s2069_s0 + $0xf8] sm:$0xff]  ;;  %vm164_vm0 = vcmask 261120   ;;  %v1426_v8 = vmov 0   ;;  %v58_v13 = vld [vmem:[%s2069_s0 + $0xe0] sm:$0xff] }
   0x4   :  { %v92_v3 = vld [vmem:[%s2069_s0 + $0x1f0] sm:$0xff]  ;;  %v109_v4 = vpack.c.bf16 %v61_v2, %v60_v1  ;;  %v93_v5 = vld [vmem:[%s2069_s0 + $0x1f8] sm:$0xff]  ;;  %1396 = vset.pattern.permute.xlu0 %v1426_v8  ;;  %1397 = vset.pattern.permute.xlu1 %v1426_v8  ;;  %v59_v15 = vld [vmem:[%s2069_s0 + $0xe8] sm:$0xff] }
   0x5   :  { %v44_v6 = vld [vmem:[%s2069_s0 + $0x70] sm:$0xff]  ;;  %v45_v7 = vld [vmem:[%s2069_s0 + $0x78] sm:$0xff]  ;;  %v125_v9 = vpack.c.bf16 %v93_v5, %v92_v3  ;;  %v90_v16 = vld [vmem:[%s2069_s0 + $0x1e0] sm:$0xff]  ;;  %v108_v19 = vpack.c.bf16 %v59_v15, %v58_v13 }
   0x6   :  { %v101_v10 = vpack.c.bf16 %v45_v7, %v44_v6  ;;  %v76_v11 = vld [vmem:[%s2069_s0 + $0x170] sm:$0xff]  ;;  %v77_v12 = vld [vmem:[%s2069_s0 + $0x178] sm:$0xff]  ;;  %1361 = vmatprep.subr.msk.bf16.mxu0 %vm164_vm0, %v109_v4  ;;  %v91_v17 = vld [vmem:[%s2069_s0 + $0x1e8] sm:$0xff] }
   0x7   :  { %v117_v14 = vpack.c.bf16 %v77_v12, %v76_v11  ;;  %1369 = vmatprep.subr.msk.bf16.mxu1 %vm164_vm0, %v125_v9  ;;  %v124_v20 = vpack.c.bf16 %v91_v17, %v90_v16  ;;  %v42_v21 = vld [vmem:[%s2069_s0 + $0x60] sm:$0xff]  ;;  %v43_v22 = vld [vmem:[%s2069_s0 + $0x68] sm:$0xff]  ;;  %v56_v28 = vld [vmem:[%s2069_s0 + $0xd0] sm:$0xff] }
   0x8   :  { %v193_v18 = vsel %vm164_vm0, %v101_v10, 0  ;;  %v74_v23 = vld [vmem:[%s2069_s0 + $0x160] sm:$0xff]  ;;  %v75_v25 = vld [vmem:[%s2069_s0 + $0x168] sm:$0xff]  ;;  %v100_v26 = vpack.c.bf16 %v43_v22, %v42_v21  ;;  %v57_v29 = vld [vmem:[%s2069_s0 + $0xd8] sm:$0xff] }
   0x9   :  { %1282 = vmatpush3.bf16.xpose.msra.mxu0 %v193_v18  ;;  %v241_v24 = vsel %vm164_vm0, %v117_v14, 0  ;;  %v116_v27 = vpack.c.bf16 %v75_v25, %v74_v23  ;;  %v88_v30 = vld [vmem:[%s2069_s0 + $0x1d0] sm:$0xff]  ;;  %v89_v31 = vld [vmem:[%s2069_s0 + $0x1d8] sm:$0xff]  ;;  %v107_v33 = vpack.c.bf16 %v57_v29, %v56_v28  ;;  %v54_v42 = vld [vmem:[%s2069_s0 + $0xc0] sm:$0xff] }
   0xa   :  { %1302 = vmatpush3.bf16.xpose.msra.mxu1 %v241_v24  ;;  %1362 = vmatprep.subr.msk.bf16.mxu0 %vm164_vm0, %v108_v19  ;;  %v190_v32 = vsel %vm164_vm0, %v100_v26, 0  ;;  %v123_v35 = vpack.c.bf16 %v89_v31, %v88_v30  ;;  %v40_v36 = vld [vmem:[%s2069_s0 + $0x50] sm:$0xff]  ;;  %v41_v37 = vld [vmem:[%s2069_s0 + $0x58] sm:$0xff]  ;;  %v55_v43 = vld [vmem:[%s2069_s0 + $0xc8] sm:$0xff] }
   0xb   :  { %1370 = vmatprep.subr.msk.bf16.mxu1 %vm164_vm0, %v124_v20  ;;  %v238_v34 = vsel %vm164_vm0, %v116_v27, 0  ;;  %v72_v38 = vld [vmem:[%s2069_s0 + $0x150] sm:$0xff]  ;;  %v73_v39 = vld [vmem:[%s2069_s0 + $0x158] sm:$0xff]  ;;  %v99_v40 = vpack.c.bf16 %v41_v37, %v40_v36  ;;  %v86_v44 = vld [vmem:[%s2069_s0 + $0x1c0] sm:$0xff]  ;;  %v106_v47 = vpack.c.bf16 %v55_v43, %v54_v42 }
   0xc   :  { %v115_v41 = vpack.c.bf16 %v73_v39, %v72_v38  ;;  %v87_v45 = vld [vmem:[%s2069_s0 + $0x1c8] sm:$0xff]  ;;  %v38_v48 = vld [vmem:[%s2069_s0 + $0x40] sm:$0xff]  ;;  %v52_v57 = vld [vmem:[%s2069_s0 + $0xb0] sm:$0xff] }
   0xd   :  { %v187_v46 = vsel %vm164_vm0, %v99_v40, 0  ;;  %v122_v50 = vpack.c.bf16 %v87_v45, %v86_v44  ;;  %v39_v51 = vld [vmem:[%s2069_s0 + $0x48] sm:$0xff]  ;;  %v70_v52 = vld [vmem:[%s2069_s0 + $0x140] sm:$0xff]  ;;  %v53_v58 = vld [vmem:[%s2069_s0 + $0xb8] sm:$0xff] }
   0xe   :  { %v235_v49 = vsel %vm164_vm0, %v115_v41, 0  ;;  %v71_v53 = vld [vmem:[%s2069_s0 + $0x148] sm:$0xff]  ;;  %v98_v54 = vpack.c.bf16 %v39_v51, %v38_v48  ;;  %v1586_v56 = vld [vmem:[%s2070_s1] sm:$0xff]   ;;  %v132_v59 = vld [vmem:[%s2071_s2 + $0x10] sm:$0xff]  ;;  %v105_v3 = vpack.c.bf16 %v53_v58, %v52_v57 }
   0xf   :  { %v114_v55 = vpack.c.bf16 %v71_v53, %v70_v52  ;;  %v84_v60 = vld [vmem:[%s2069_s0 + $0x1b0] sm:$0xff]  ;;  %v85_v61 = vld [vmem:[%s2069_s0 + $0x1b8] sm:$0xff]  ;;  %1297 = vmatprep.mubr.msk.bf16.mxu0 %vm164_vm0, %v1586_v56  ;;  %1317 = vmatprep.mubr.msk.bf16.mxu1 %vm164_vm0, %v1586_v56  ;;  %v130_v62 = vld [vmem:[%s2071_s2] sm:$0xff] }
  0x10   :  { %v36_v63 = vld [vmem:[%s2069_s0 + $0x30] sm:$0xff]  ;;  %v37_v0 = vld [vmem:[%s2069_s0 + $0x38] sm:$0xff]  ;;  %146 = vperm.xlu0 %1396, %v132_v59   ;;  %136 = vperm.xlu1 %1397, %v130_v62   ;;  %v184_v1 = vsel %vm164_vm0, %v98_v54, 0  ;;  %v131_v7 = vld [vmem:[%s2071_s2 + $0x8] sm:$0xff]  ;;  %v121_v9 = vpack.c.bf16 %v85_v61, %v84_v60 }
  0x11   :  { %1284 = vmatpush3.bf16.xpose.msra.mxu0 %v190_v32  ;;  %v232_v2 = vsel %vm164_vm0, %v114_v55, 0  ;;  %v68_v4 = vld [vmem:[%s2069_s0 + $0x130] sm:$0xff]  ;;  %v69_v5 = vld [vmem:[%s2069_s0 + $0x138] sm:$0xff] }
  0x12   :  { %1304 = vmatpush3.bf16.xpose.msra.mxu1 %v238_v34  ;;  %1363 = vmatprep.subr.msk.bf16.mxu0 %vm164_vm0, %v107_v33  ;;  %v133_v6 = vld [vmem:[%s2071_s2 + $0x18] sm:$0xff] }
  0x13   :  { %1371 = vmatprep.subr.msk.bf16.mxu1 %vm164_vm0, %v123_v35 }
  0x14   :  { %151 = vperm.xlu0 %1396, %v133_v6  }
  0x19   :  { %1286 = vmatpush3.bf16.xpose.msra.mxu0 %v187_v46 }
  0x1a   :  { %1306 = vmatpush3.bf16.xpose.msra.mxu1 %v235_v49  ;;  %1364 = vmatprep.subr.msk.bf16.mxu0 %vm164_vm0, %v106_v47 }
  0x1b   :  { %1372 = vmatprep.subr.msk.bf16.mxu1 %vm164_vm0, %v122_v50 }
  0x21   :  { %1288 = vmatpush3.bf16.xpose.msra.mxu0 %v184_v1 }
  0x22   :  { %14 = vsyncpa [#allocation4], 0  ;;  %1308 = vmatpush3.bf16.xpose.msra.mxu1 %v232_v2  ;;  %1365 = vmatprep.subr.msk.bf16.mxu0 %vm164_vm0, %v105_v3  ;;  %v97_v10 = vpack.c.bf16 %v37_v0, %v36_v63  ;;  %v113_v11 = vpack.c.bf16 %v69_v5, %v68_v4  ;;  %v50_v12 = vld [vmem:[%s2069_s0 + $0xa0] sm:$0xff]  ;;  %v51_v13 = vld [vmem:[%s2069_s0 + $0xa8] sm:$0xff] }
  0x23   :  { %1373 = vmatprep.subr.msk.bf16.mxu1 %vm164_vm0, %v121_v9  ;;  %141 = vperm.xlu1 %1397, %v131_v7   ;;  %v82_v14 = vld [vmem:[%s2069_s0 + $0x1a0] sm:$0xff]  ;;  %v83_v15 = vld [vmem:[%s2069_s0 + $0x1a8] sm:$0xff]  ;;  %v104_v17 = vpack.c.bf16 %v51_v13, %v50_v12  ;;  %v48_v27 = vld [vmem:[%s2069_s0 + $0x90] sm:$0xff] }
  0x24   :  { %726 = vperm.xlu0 %1396, %v132_v59   ;;  %v181_v16 = vsel %vm164_vm0, %v97_v10, 0  ;;  %v229_v18 = vsel %vm164_vm0, %v113_v11, 0  ;;  %v120_v19 = vpack.c.bf16 %v83_v15, %v82_v14  ;;  %v34_v20 = vld [vmem:[%s2069_s0 + $0x20] sm:$0xff]  ;;  %v35_v21 = vld [vmem:[%s2069_s0 + $0x28] sm:$0xff]  ;;  %v49_v28 = vld [vmem:[%s2069_s0 + $0x98] sm:$0xff] }
  0x25   :  { %v66_v22 = vld [vmem:[%s2069_s0 + $0x120] sm:$0xff]  ;;  %v67_v23 = vld [vmem:[%s2069_s0 + $0x128] sm:$0xff]  ;;  %v96_v24 = vpack.c.bf16 %v35_v21, %v34_v20  ;;  %v80_v29 = vld [vmem:[%s2069_s0 + $0x190] sm:$0xff]  ;;  %v103_v33 = vpack.c.bf16 %v49_v28, %v48_v27 }
  0x26   :  { %v399_v25 = vld [vmem:[%s2073_s4] sm:$0xff]  ;;  %v112_v26 = vpack.c.bf16 %v67_v23, %v66_v22  ;;  %v81_v30 = vld [vmem:[%s2069_s0 + $0x198] sm:$0xff]  ;;  %v400_v31 = vld [vmem:[%s2073_s4 + $0x8] sm:$0xff] }
  0x27   :  { %731 = vperm.xlu1 %1397, %v133_v6   ;;  %v178_v32 = vsel %vm164_vm0, %v96_v24, 0  ;;  %v119_v35 = vpack.c.bf16 %v81_v30, %v80_v29  ;;  %v32_v36 = vld [vmem:[%s2069_s0 + $0x10] sm:$0xff]  ;;  %v33_v37 = vld [vmem:[%s2069_s0 + $0x18] sm:$0xff]  ;;  %v513_v41 = vld [vmem:[%s2074_s5] sm:$0xff] }
  0x28   :  { %716 = vperm.xlu0 %1396, %v130_v62   ;;  %v226_v34 = vsel %vm164_vm0, %v112_v26, 0  ;;  %v64_v38 = vld [vmem:[%s2069_s0 + $0x110] sm:$0xff]  ;;  %v65_v39 = vld [vmem:[%s2069_s0 + $0x118] sm:$0xff]  ;;  %v95_v40 = vpack.c.bf16 %v33_v37, %v32_v36  ;;  %v46_v43 = vld [vmem:[%s2069_s0 + $0x80] sm:$0xff] }
  0x29   :  { %1290 = vmatpush3.bf16.xpose.msra.mxu0 %v181_v16  ;;  %v111_v42 = vpack.c.bf16 %v65_v39, %v64_v38  ;;  %v47_v44 = vld [vmem:[%s2069_s0 + $0x88] sm:$0xff]  ;;  %v78_v45 = vld [vmem:[%s2069_s0 + $0x180] sm:$0xff] }
  0x2a   :  { %1310 = vmatpush3.bf16.xpose.msra.mxu1 %v229_v18  ;;  %1366 = vmatprep.subr.msk.bf16.mxu0 %vm164_vm0, %v104_v17  ;;  %v79_v46 = vld [vmem:[%s2069_s0 + $0x188] sm:$0xff]  ;;  %v175_v48 = vsel %vm164_vm0, %v95_v40, 0  ;;  %v102_v49 = vpack.c.bf16 %v47_v44, %v46_v43  ;;  %v30_v52 = vld [vmem:[%s2069_s0] sm:$0xff] }
  0x2b   :  { %1374 = vmatprep.subr.msk.bf16.mxu1 %vm164_vm0, %v120_v19  ;;  %721 = vperm.xlu1 %1397, %v131_v7   ;;  %v514_v47 = vld [vmem:[%s2074_s5 + $0x8] sm:$0xff]  ;;  %v223_v50 = vsel %vm164_vm0, %v111_v42, 0  ;;  %v118_v51 = vpack.c.bf16 %v79_v46, %v78_v45  ;;  %v62_v54 = vld [vmem:[%s2069_s0 + $0x100] sm:$0xff] }
  0x2c   :  { %403 = vperm.xlu0 %1396, %v399_v25   ;;  %v31_v53 = vld [vmem:[%s2069_s0 + $0x8] sm:$0xff]  ;;  %v561_v58 = vld [vmem:[#allocation2] sm:$0x1] }
  0x2d   :  { %v63_v55 = vld [vmem:[%s2069_s0 + $0x108] sm:$0xff]  ;;  %v94_v57 = vpack.c.bf16 %v31_v53, %v30_v52  ;;  %v1140_v60 = vld [vmem:[#allocation2] sm:$0x1] }
  0x2e   :  { %v110_v59 = vpack.c.bf16 %v63_v55, %v62_v54  ;;  %v1399_v63 = vld [vmem:[%s2070_s1 + $0x8] sm:$0xff]   ;;  %v1270_v54 = vld [vmem:[%s2069_s0 + $0x3f0] sm:$0xff] }
  0x2f   :  { %408 = vperm.xlu1 %1397, %v400_v31   ;;  %v172_v61 = vsel %vm164_vm0, %v94_v57, 0  ;;  %v1222_v55 = vld [vmem:[%s2069_s0 + $0x270] sm:$0xff]  ;;  %v1223_v57 = vld [vmem:[%s2069_s0 + $0x278] sm:$0xff] }
  0x30   :  { %982 = vperm.xlu0 %1396, %v399_v25   ;;  %v220_v62 = vsel %vm164_vm0, %v110_v59, 0 }
  0x31   :  { %1292 = vmatpush3.bf16.xpose.msra.mxu0 %v178_v32 }
  0x32   :  { %1312 = vmatpush3.bf16.xpose.msra.mxu1 %v226_v34  ;;  %1367 = vmatprep.subr.msk.bf16.mxu0 %vm164_vm0, %v103_v33 }
  0x33   :  { %1375 = vmatprep.subr.msk.bf16.mxu1 %vm164_vm0, %v119_v35  ;;  %987 = vperm.xlu1 %1397, %v400_v31  }
  0x34   :  { %517 = vperm.xlu0 %1396, %v513_v41  }
  0x37   :  { %522 = vperm.xlu1 %1397, %v514_v47  }
  0x38   :  { %1096 = vperm.xlu0 %1396, %v513_v41  }
  0x39   :  { %1294 = vmatpush3.bf16.xpose.msra.mxu0 %v175_v48  ;;  %v1238_v48 = vld [vmem:[%s2069_s0 + $0x2f0] sm:$0xff] }
  0x3a   :  { %1314 = vmatpush3.bf16.xpose.msra.mxu1 %v223_v50  ;;  %1368 = vmatprep.subr.msk.bf16.mxu0 %vm164_vm0, %v102_v49  ;;  %v1239_v49 = vld [vmem:[%s2069_s0 + $0x2f8] sm:$0xff] }
  0x3b   :  { %1376 = vmatprep.subr.msk.bf16.mxu1 %vm164_vm0, %v118_v51  ;;  %1101 = vperm.xlu1 %1397, %v514_v47  }
  0x3c   :  { %564 = vperm.xlu0 %1396, %v561_v58  }
  0x3f   :  { %1143 = vperm.xlu1 %1397, %v1140_v60  }
  0x41   :  { %1296 = vmatpush3.bf16.xpose.msra.mxu0 %v172_v61  ;;  %v1271_v61 = vld [vmem:[%s2069_s0 + $0x3f8] sm:$0xff] }
  0x42   :  { %1316 = vmatpush3.bf16.xpose.msra.mxu1 %v220_v62  ;;  %v1254_v62 = vld [vmem:[%s2069_s0 + $0x370] sm:$0xff] }
  0x48   :  { %1298 = vmatmul.mubr.msk.bf16.vlgmr.msra.gmra.mxu0 %vm164_vm0, %v1586_v56 }
  0x49   :  { %1318 = vmatmul.mubr.msk.bf16.vlgmr.msra.gmra.mxu1 %vm164_vm0, %v1586_v56  ;;  %1299 = vmatprep.mubr.msk.bf16.mxu0 %vm164_vm0, %v1399_v63 }
  0x4a   :  { %1319 = vmatprep.mubr.msk.bf16.mxu1 %vm164_vm0, %v1399_v63 }
  0x50   :  { %1300 = vmatmul.mubr.msk.bf16.gmra.mxu0 %vm164_vm0, %v1399_v63 }
  0x51   :  { %1320 = vmatmul.mubr.msk.bf16.gmra.mxu1 %vm164_vm0, %v1399_v63  ;;  %451 = vmatprep.mubr.bf16.mxu0 %v1426_v8  ;;  %v1255_v63 = vld [vmem:[%s2069_s0 + $0x378] sm:$0xff] }
  0x52   :  { %494 = vmatprep.mubr.bf16.mxu1 %v1426_v8 }
  0x8b   :  { %v147_v5 = vpop.permute.xlu0 %146  ;;  %v137_v56 = vpop.permute.xlu1 %136 }
  0x8f   :  { %v152_v13 = vpop.permute.xlu0 %151 }
  0x9e   :  { %v142_v15 = vpop.permute.xlu1 %141 }
 0x108   :  { %v301_v0 = vpop.f32.mrf.mxu0 }
 0x109   :  { %v354_v1 = vpop.f32.mrf.mxu1  ;;  %v302_v17 = vadd.f32 %v301_v0, %v137_v56 }
 0x10a   :  { %v303_v2 = vpop.f32.mrf.mxu0  ;;  %v355_v44 = vadd.f32 %v354_v1, %v137_v56 }
 0x10b   :  { %v356_v3 = vpop.f32.mrf.mxu1  ;;  %v304_v27 = vadd.f32 %v303_v2, %v137_v56  ;;  %v373_v0 = vmax.f32 %v302_v17, 0.0 }
 0x10c   :  { %v305_v4 = vpop.f32.mrf.mxu0  ;;  %v357_v28 = vadd.f32 %v356_v3, %v137_v56  ;;  %v375_v2 = vmax.f32 %v355_v44, 0.0  ;;  %v689_v3 = vpack.c.bf16 %v1239_v49, %v1238_v48  ;;  %v697_v56 = vpack.c.bf16 %v1255_v63, %v1254_v62  ;;  %v1217_v48 = vld [vmem:[%s2069_s0 + $0x248] sm:$0xff]  ;;  %v1248_v49 = vld [vmem:[%s2069_s0 + $0x340] sm:$0xff]  ;;  %v1214_v62 = vld [vmem:[%s2069_s0 + $0x230] sm:$0xff] }
 0x10d   :  { %v358_v6 = vpop.f32.mrf.mxu1  ;;  %v306_v32 = vadd.f32 %v305_v4, %v142_v15  ;;  %v374_v45 = vmax.f32 %v304_v27, 0.0  ;;  %v681_v4 = vpack.c.bf16 %v1223_v57, %v1222_v55  ;;  %v1266_v27 = vld [vmem:[%s2069_s0 + $0x3d0] sm:$0xff]  ;;  %v1263_v57 = vld [vmem:[%s2069_s0 + $0x3b8] sm:$0xff] }
 0x10e   :  { %v307_v7 = vpop.f32.mrf.mxu0  ;;  %v359_v33 = vadd.f32 %v358_v6, %v142_v15  ;;  %v376_v50 = vmax.f32 %v357_v28, 0.0  ;;  %v705_v6 = vpack.c.bf16 %v1271_v61, %v1270_v54  ;;  %v1267_v28 = vld [vmem:[%s2069_s0 + $0x3d8] sm:$0xff]  ;;  %v1262_v55 = vld [vmem:[%s2069_s0 + $0x3b0] sm:$0xff] }
 0x10f   :  { %v360_v9 = vpop.f32.mrf.mxu1  ;;  %v308_v18 = vadd.f32 %v307_v7, %v142_v15  ;;  %v377_v51 = vmax.f32 %v306_v32, 0.0  ;;  %v1236_v7 = vld [vmem:[%s2069_s0 + $0x2e0] sm:$0xff]  ;;  %v703_v32 = vpack.c.bf16 %v1267_v28, %v1266_v27  ;;  %v1231_v54 = vld [vmem:[%s2069_s0 + $0x2b8] sm:$0xff]  ;;  %v701_v61 = vpack.c.bf16 %v1263_v57, %v1262_v55  ;;  %v1210_v27 = vld [vmem:[%s2069_s0 + $0x210] sm:$0xff] }
 0x110   :  { %v311_v10 = vpop.f32.mrf.mxu0  ;;  %v361_v22 = vadd.f32 %v360_v9, %v142_v15  ;;  %v379_v58 = vmax.f32 %v359_v33, 0.0  ;;  %v1237_v9 = vld [vmem:[%s2069_s0 + $0x2e8] sm:$0xff]  ;;  %v1218_v33 = vld [vmem:[%s2069_s0 + $0x250] sm:$0xff]  ;;  %v1215_v63 = vld [vmem:[%s2069_s0 + $0x238] sm:$0xff] }
 0x111   :  { %v364_v11 = vpop.f32.mrf.mxu1  ;;  %v312_v23 = vadd.f32 %v311_v10, %v147_v5  ;;  %v378_v36 = vmax.f32 %v308_v18, 0.0  ;;  %v688_v15 = vpack.c.bf16 %v1237_v9, %v1236_v7  ;;  %v1220_v18 = vld [vmem:[%s2069_s0 + $0x260] sm:$0xff]  ;;  %v1211_v28 = vld [vmem:[%s2069_s0 + $0x218] sm:$0xff] }
 0x112   :  { %v313_v12 = vpop.f32.mrf.mxu0  ;;  %v365_v29 = vadd.f32 %v364_v11, %v147_v5  ;;  %v380_v40 = vmax.f32 %v361_v22, 0.0  ;;  %v393_v10 = vpack.c.bf16 %v379_v58, %v375_v2  ;;  %v1400_v11 = vld [vmem:[%s2072_s3] sm:$0xff]   ;;  %v1253_v22 = vld [vmem:[%s2069_s0 + $0x368] sm:$0xff]  ;;  %v677_v2 = vpack.c.bf16 %v1215_v63, %v1214_v62 }
 0x113   :  { %v366_v14 = vpop.f32.mrf.mxu1  ;;  %v314_v19 = vadd.f32 %v313_v12, %v147_v5  ;;  %v381_v41 = vmax.f32 %v312_v23, 0.0  ;;  %v392_v59 = vpack.c.bf16 %v378_v36, %v374_v45  ;;  %v1268_v12 = vld [vmem:[%s2069_s0 + $0x3e0] sm:$0xff]  ;;  %v1251_v36 = vld [vmem:[%s2069_s0 + $0x358] sm:$0xff] }
 0x114   :  { %v315_v16 = vpop.f32.mrf.mxu0  ;;  %v367_v24 = vadd.f32 %v366_v14, %v147_v5  ;;  %v383_v46 = vmax.f32 %v365_v29, 0.0  ;;  %v394_v1 = vpack.c.bf16 %v380_v40, %v376_v50  ;;  %v391_v5 = vpack.c.bf16 %v377_v51, %v373_v0  ;;  %v1233_v40 = vld [vmem:[%s2069_s0 + $0x2c8] sm:$0xff]  ;;  %v1246_v0 = vld [vmem:[%s2069_s0 + $0x330] sm:$0xff] }
 0x115   :  { %v316_v20 = vadd.f32 %v315_v16, %v152_v13  ;;  %v368_v21 = vpop.f32.mrf.mxu1  ;;  %v382_v37 = vmax.f32 %v314_v19, 0.0  ;;  %v772_v14 = vsel %vm164_vm0, %v681_v4, 0  ;;  %v820_v16 = vsel %vm164_vm0, %v697_v56, 0  ;;  %v1221_v19 = vld [vmem:[%s2069_s0 + $0x268] sm:$0xff]  ;;  %v1228_v4 = vld [vmem:[%s2069_s0 + $0x2a0] sm:$0xff] }
 0x116   :  { %v369_v25 = vadd.f32 %v368_v21, %v152_v13  ;;  %v317_v26 = vpop.f32.mrf.mxu0  ;;  %v384_v42 = vmax.f32 %v367_v24, 0.0  ;;  %v1252_v21 = vld [vmem:[%s2069_s0 + $0x360] sm:$0xff]  ;;  %v680_v23 = vpack.c.bf16 %v1221_v19, %v1220_v18  ;;  %v1249_v50 = vld [vmem:[%s2069_s0 + $0x348] sm:$0xff]  ;;  %v760_v7 = vsel %vm164_vm0, %v677_v2, 0  ;;  %v1226_v18 = vld [vmem:[%s2069_s0 + $0x290] sm:$0xff] }
 0x117   :  { %v318_v30 = vadd.f32 %v317_v26, %v152_v13  ;;  %v370_v31 = vpop.f32.mrf.mxu1  ;;  %v385_v34 = vmax.f32 %v316_v20, 0.0  ;;  %v1796_v20 = vld [vmem:[%s2070_s1] sm:$0xff]   ;;  %v696_v24 = vpack.c.bf16 %v1253_v22, %v1252_v21  ;;  %v1235_v26 = vld [vmem:[%s2069_s0 + $0x2d8] sm:$0xff]  ;;  %v1261_v56 = vld [vmem:[%s2069_s0 + $0x3a8] sm:$0xff] }
 0x118   :  { %v371_v35 = vadd.f32 %v370_v31, %v152_v13  ;;  %v387_v38 = vmax.f32 %v369_v25, 0.0  ;;  %v1269_v13 = vld [vmem:[%s2069_s0 + $0x3e8] sm:$0xff]  ;;  %v1234_v25 = vld [vmem:[%s2069_s0 + $0x2d0] sm:$0xff]  ;;  %v769_v29 = vsel %vm164_vm0, %v680_v23, 0  ;;  %v1227_v19 = vld [vmem:[%s2069_s0 + $0x298] sm:$0xff] }
 0x119   :  { %v386_v39 = vmax.f32 %v318_v30, 0.0  ;;  %v395_v52 = vpack.c.bf16 %v385_v34, %v381_v41  ;;  %v704_v17 = vpack.c.bf16 %v1269_v13, %v1268_v12  ;;  %v687_v30 = vpack.c.bf16 %v1235_v26, %v1234_v25  ;;  %v1219_v34 = vld [vmem:[%s2069_s0 + $0x258] sm:$0xff]  ;;  %v1264_v41 = vld [vmem:[%s2069_s0 + $0x3c0] sm:$0xff]  ;;  %v1213_v13 = vld [vmem:[%s2069_s0 + $0x228] sm:$0xff] }
 0x11a   :  { %v388_v43 = vmax.f32 %v371_v35, 0.0  ;;  %v397_v60 = vpack.c.bf16 %v387_v38, %v383_v46  ;;  %v817_v31 = vsel %vm164_vm0, %v696_v24, 0  ;;  %v1250_v35 = vld [vmem:[%s2069_s0 + $0x350] sm:$0xff]  ;;  %v1212_v12 = vld [vmem:[%s2069_s0 + $0x220] sm:$0xff]  ;;  %v1259_v22 = vld [vmem:[%s2069_s0 + $0x398] sm:$0xff]  ;;  %v683_v24 = vpack.c.bf16 %v1227_v19, %v1226_v18 }
 0x11b   :  { %v396_v47 = vpack.c.bf16 %v386_v39, %v382_v37  ;;  %v679_v37 = vpack.c.bf16 %v1219_v34, %v1218_v33  ;;  %v695_v38 = vpack.c.bf16 %v1251_v36, %v1250_v35  ;;  %v1232_v39 = vld [vmem:[%s2069_s0 + $0x2c0] sm:$0xff]  ;;  %v1258_v21 = vld [vmem:[%s2069_s0 + $0x390] sm:$0xff]  ;;  %v1225_v34 = vld [vmem:[%s2069_s0 + $0x288] sm:$0xff] }
 0x11c   :  { %v398_v53 = vpack.c.bf16 %v388_v43, %v384_v42  ;;  %v1265_v42 = vld [vmem:[%s2069_s0 + $0x3c8] sm:$0xff]  ;;  %v686_v44 = vpack.c.bf16 %v1233_v40, %v1232_v39  ;;  %v699_v26 = vpack.c.bf16 %v1259_v22, %v1258_v21  ;;  %v1224_v33 = vld [vmem:[%s2069_s0 + $0x280] sm:$0xff] }
 0x11d   :  { %431 = vmatprep.subr.bf16.mxu0 %v396_v47  ;;  %v766_v43 = vsel %vm164_vm0, %v679_v37, 0  ;;  %v814_v45 = vsel %vm164_vm0, %v695_v38, 0  ;;  %v702_v46 = vpack.c.bf16 %v1265_v42, %v1264_v41  ;;  %v1216_v47 = vld [vmem:[%s2069_s0 + $0x240] sm:$0xff]  ;;  %v1257_v36 = vld [vmem:[%s2069_s0 + $0x388] sm:$0xff]  ;;  %v682_v38 = vpack.c.bf16 %v1225_v34, %v1224_v33 }
 0x11e   :  { %474 = vmatprep.subr.bf16.mxu1 %v398_v53  ;;  %432 = vmatpush1.bf16.msra.mxu0 %v395_v52  ;;  %v678_v51 = vpack.c.bf16 %v1217_v48, %v1216_v47  ;;  %v694_v52 = vpack.c.bf16 %v1249_v50, %v1248_v49  ;;  %v1230_v53 = vld [vmem:[%s2069_s0 + $0x2b0] sm:$0xff]  ;;  %v1256_v35 = vld [vmem:[%s2069_s0 + $0x380] sm:$0xff]  ;;  %v1209_v42 = vld [vmem:[%s2069_s0 + $0x208] sm:$0xff]  ;;  %v1995_v50 = vpop.permute.xlu0 %726 }
 0x11f   :  { %475 = vmatpush1.bf16.msra.mxu1 %v397_v60  ;;  %433 = vmatprep.subr.bf16.mxu0 %v392_v59  ;;  %v685_v59 = vpack.c.bf16 %v1231_v54, %v1230_v53  ;;  %v698_v40 = vpack.c.bf16 %v1257_v36, %v1256_v35  ;;  %v1208_v41 = vld [vmem:[%s2069_s0 + $0x200] sm:$0xff]  ;;  %v1402_v49 = vld [vmem:[%s2070_s1 + $0x8] sm:$0xff]  }
 0x120   :  { %476 = vmatprep.subr.bf16.mxu1 %v394_v1  ;;  %v763_v58 = vsel %vm164_vm0, %v678_v51, 0  ;;  %v811_v60 = vsel %vm164_vm0, %v694_v52, 0  ;;  %v1247_v1 = vld [vmem:[%s2069_s0 + $0x338] sm:$0xff]  ;;  %v1997_v51 = vpop.permute.xlu1 %731 }
 0x122   :  { %434 = vmatpush1.bf16.msra.mxu0 %v391_v5  ;;  %v1229_v5 = vld [vmem:[%s2069_s0 + $0x2a8] sm:$0xff]  ;;  %v1999_v52 = vpop.permute.xlu0 %716 }
 0x123   :  { %477 = vmatpush1.bf16.msra.mxu1 %v393_v10  ;;  %1377 = vmatprep.subr.msk.bf16.mxu0 %vm164_vm0, %v689_v3  ;;  %v693_v3 = vpack.c.bf16 %v1247_v1, %v1246_v0  ;;  %v684_v9 = vpack.c.bf16 %v1229_v5, %v1228_v4 }
 0x124   :  { %1385 = vmatprep.subr.msk.bf16.mxu1 %vm164_vm0, %v705_v6  ;;  %v1260_v6 = vld [vmem:[%s2069_s0 + $0x3a0] sm:$0xff]  ;;  %v2001_v53 = vpop.permute.xlu1 %721 }
 0x125   :  { %1206 = vmatmul.mubr.msk.bf16.vlgmr.msra.gmra.mxu0 %vm164_vm0, %v1400_v11  ;;  %v808_v10 = vsel %vm164_vm0, %v693_v3, 0 }
 0x126   :  { %1207 = vmatmul.mubr.msk.bf16.vlgmr.msra.gmra.mxu1 %vm164_vm0, %v1400_v11  ;;  %1322 = vmatpush3.bf16.xpose.msra.mxu0 %v772_v14  ;;  %v700_v11 = vpack.c.bf16 %v1261_v56, %v1260_v6  ;;  %v1244_v14 = vld [vmem:[%s2069_s0 + $0x320] sm:$0xff] }
 0x127   :  { %1342 = vmatpush3.bf16.xpose.msra.mxu1 %v820_v16  ;;  %1378 = vmatprep.subr.msk.bf16.mxu0 %vm164_vm0, %v688_v15  ;;  %v1245_v15 = vld [vmem:[%s2069_s0 + $0x328] sm:$0xff]  ;;  %v676_v16 = vpack.c.bf16 %v1213_v13, %v1212_v12 }
 0x128   :  { %1386 = vmatprep.subr.msk.bf16.mxu1 %vm164_vm0, %v704_v17  ;;  %1337 = vmatprep.mubr.msk.bf16.mxu0 %vm164_vm0, %v1796_v20  ;;  %v692_v17 = vpack.c.bf16 %v1245_v15, %v1244_v14  ;;  %v409_v54 = vpop.permute.xlu1 %408 }
 0x129   :  { %1357 = vmatprep.mubr.msk.bf16.mxu1 %vm164_vm0, %v1796_v20  ;;  %v757_v23 = vsel %vm164_vm0, %v676_v16, 0 }
 0x12a   :  { %v805_v25 = vsel %vm164_vm0, %v692_v17, 0 }
 0x12e   :  { %1324 = vmatpush3.bf16.xpose.msra.mxu0 %v769_v29  ;;  %v1242_v29 = vld [vmem:[%s2069_s0 + $0x310] sm:$0xff] }
 0x12f   :  { %1344 = vmatpush3.bf16.xpose.msra.mxu1 %v817_v31  ;;  %1379 = vmatprep.subr.msk.bf16.mxu0 %vm164_vm0, %v687_v30  ;;  %v1243_v30 = vld [vmem:[%s2069_s0 + $0x318] sm:$0xff]  ;;  %v675_v31 = vpack.c.bf16 %v1211_v28, %v1210_v27 }
 0x130   :  { %1387 = vmatprep.subr.msk.bf16.mxu1 %vm164_vm0, %v703_v32  ;;  %v691_v32 = vpack.c.bf16 %v1243_v30, %v1242_v29  ;;  %v567_v30 = vlaneseq }
 0x131   :  { %v754_v37 = vsel %vm164_vm0, %v675_v31, 0 }
 0x132   :  { %v802_v39 = vsel %vm164_vm0, %v691_v32, 0  ;;  %vm2019_vm1 = vcmp.lt.s32.totalorder %v567_v30, 512 }
 0x136   :  { %1326 = vmatpush3.bf16.xpose.msra.mxu0 %v766_v43  ;;  %v1240_v43 = vld [vmem:[%s2069_s0 + $0x300] sm:$0xff] }
 0x137   :  { %1346 = vmatpush3.bf16.xpose.msra.mxu1 %v814_v45  ;;  %1380 = vmatprep.subr.msk.bf16.mxu0 %vm164_vm0, %v686_v44  ;;  %v1241_v44 = vld [vmem:[%s2069_s0 + $0x308] sm:$0xff]  ;;  %v674_v45 = vpack.c.bf16 %v1209_v42, %v1208_v41 }
 0x138   :  { %1388 = vmatprep.subr.msk.bf16.mxu1 %vm164_vm0, %v702_v46  ;;  %v690_v46 = vpack.c.bf16 %v1241_v44, %v1240_v43 }
 0x139   :  { %v751_v47 = vsel %vm164_vm0, %v674_v45, 0  ;;  %v1427_v45 = vmov 1966171168  }
 0x13a   :  { %v799_v48 = vsel %vm164_vm0, %v690_v46, 0  ;;  %v582_v46 = vunpack.c.l.s4 %v1427_v45 }
 0x13e   :  { %1328 = vmatpush3.bf16.xpose.msra.mxu0 %v763_v58 }
 0x13f   :  { %1348 = vmatpush3.bf16.xpose.msra.mxu1 %v811_v60  ;;  %1381 = vmatprep.subr.msk.bf16.mxu0 %vm164_vm0, %v685_v59  ;;  %v2005_v60 = vpop.permute.xlu1 %987 }
 0x140   :  { %1389 = vmatprep.subr.msk.bf16.mxu1 %vm164_vm0, %v701_v61 }
 0x143   :  { %v523_v13 = vpop.permute.xlu1 %522 }
 0x146   :  { %1330 = vmatpush3.bf16.xpose.msra.mxu0 %v760_v7 }
 0x147   :  { %1350 = vmatpush3.bf16.xpose.msra.mxu1 %v808_v10  ;;  %1382 = vmatprep.subr.msk.bf16.mxu0 %vm164_vm0, %v684_v9 }
 0x148   :  { %1390 = vmatprep.subr.msk.bf16.mxu1 %vm164_vm0, %v700_v11 }
 0x14e   :  { %1332 = vmatpush3.bf16.xpose.msra.mxu0 %v757_v23 }
 0x14f   :  { %1352 = vmatpush3.bf16.xpose.msra.mxu1 %v805_v25  ;;  %1383 = vmatprep.subr.msk.bf16.mxu0 %vm164_vm0, %v683_v24 }
 0x150   :  { %1391 = vmatprep.subr.msk.bf16.mxu1 %vm164_vm0, %v699_v26 }
 0x156   :  { %1334 = vmatpush3.bf16.xpose.msra.mxu0 %v754_v37 }
 0x157   :  { %1354 = vmatpush3.bf16.xpose.msra.mxu1 %v802_v39  ;;  %1384 = vmatprep.subr.msk.bf16.mxu0 %vm164_vm0, %v682_v38 }
 0x158   :  { %1392 = vmatprep.subr.msk.bf16.mxu1 %vm164_vm0, %v698_v40  ;;  %v2009_v40 = vshrl.u32 %v567_v30, 7 }
 0x15e   :  { %1336 = vmatpush3.bf16.xpose.msra.mxu0 %v751_v47 }
 0x15f   :  { %1356 = vmatpush3.bf16.xpose.msra.mxu1 %v799_v48 }
 0x165   :  { %1338 = vmatmul.mubr.msk.bf16.vlgmr.msra.gmra.mxu0 %vm164_vm0, %v1796_v20 }
 0x166   :  { %1358 = vmatmul.mubr.msk.bf16.vlgmr.msra.gmra.mxu1 %vm164_vm0, %v1796_v20  ;;  %1339 = vmatprep.mubr.msk.bf16.mxu0 %vm164_vm0, %v1402_v49  ;;  %v404_v20 = vpop.permute.xlu0 %403 }
 0x167   :  { %1359 = vmatprep.mubr.msk.bf16.mxu1 %vm164_vm0, %v1402_v49 }
 0x16a   :  { %v2003_v57 = vpop.permute.xlu0 %982 }
 0x16d   :  { %1340 = vmatmul.mubr.msk.bf16.gmra.mxu0 %vm164_vm0, %v1402_v49 }
 0x16e   :  { %1360 = vmatmul.mubr.msk.bf16.gmra.mxu1 %vm164_vm0, %v1402_v49  ;;  %1030 = vmatprep.mubr.bf16.mxu0 %v1426_v8  ;;  %v518_v12 = vpop.permute.xlu0 %517 }
 0x16f   :  { %1073 = vmatprep.mubr.bf16.mxu1 %v1426_v8 }
 0x172   :  { %v2007_v37 = vpop.permute.xlu0 %1096 }
 0x1e5   :  { %v453_v55 = vpop.f32.mrf.mxu0 }
 0x1e6   :  { %v454_v58 = vadd.f32 %v453_v55, %v404_v20  ;;  %v496_v59 = vpop.f32.mrf.mxu1 }
 0x1e7   :  { %v497_v61 = vadd.f32 %v496_v59, %v404_v20  ;;  %v455_v62 = vpop.f32.mrf.mxu0  ;;  %v565_v59 = vpop.permute.xlu0 %564 }
 0x1e8   :  { %v456_v8 = vadd.f32 %v455_v62, %v404_v20  ;;  %v498_v63 = vpop.f32.mrf.mxu1  ;;  %v505_v2 = vmax.f32 %v454_v58, 0.0 }
 0x1e9   :  { %v499_v0 = vadd.f32 %v498_v63, %v404_v20  ;;  %v457_v1 = vpop.f32.mrf.mxu0  ;;  %v507_v5 = vmax.f32 %v497_v61, 0.0 }
 0x1ea   :  { %v458_v3 = vadd.f32 %v457_v1, %v409_v54  ;;  %v500_v4 = vpop.f32.mrf.mxu1  ;;  %v506_v7 = vmax.f32 %v456_v8, 0.0  ;;  %v525_v17 = vmul.f32 %v518_v12, %v505_v2  ;;  %v583_v8 = vunpack.c.0.s8 %v582_v46 }
 0x1eb   :  { %v501_v6 = vadd.f32 %v500_v4, %v409_v54  ;;  %v459_v56 = vpop.f32.mrf.mxu0  ;;  %v508_v14 = vmax.f32 %v499_v0, 0.0  ;;  %v527_v21 = vmul.f32 %v518_v12, %v507_v5 }
 0x1ec   :  { %v509_v9 = vmax.f32 %v458_v3, 0.0  ;;  %v460_v10 = vadd.f32 %v459_v56, %v409_v54  ;;  %v502_v11 = vpop.f32.mrf.mxu1  ;;  %v526_v24 = vmul.f32 %v518_v12, %v506_v7 }
 0x1ed   :  { %v511_v15 = vmax.f32 %v501_v6, 0.0  ;;  %v503_v16 = vadd.f32 %v502_v11, %v409_v54  ;;  %v528_v27 = vmul.f32 %v518_v12, %v508_v14  ;;  %v569_v54 = vsub.s32 0, %v2009_v40 }
 0x1ee   :  { %v529_v18 = vmul.f32 %v523_v13, %v509_v9  ;;  %v510_v19 = vmax.f32 %v460_v10, 0.0  ;;  %v2015_v6 = vsub.s32 %v583_v8, %v2009_v40 }
 0x1ef   :  { %v531_v22 = vmul.f32 %v523_v13, %v511_v15  ;;  %v512_v23 = vmax.f32 %v503_v16, 0.0  ;;  %v570_v3 = vrot.slane %v565_v59, %v569_v54 }
 0x1f0   :  { %v533_v25 = vadd.f32 %v529_v18, %v525_v17  ;;  %v530_v26 = vmul.f32 %v523_v13, %v510_v19 }
 0x1f1   :  { %v547_v28 = vadd.f32 %v531_v22, %v527_v21  ;;  %v532_v29 = vmul.f32 %v523_v13, %v512_v23 }
 0x1f2   :  { %v534_v31 = vrot.slane %v533_v25, 4  ;;  %v540_v32 = vadd.f32 %v530_v26, %v526_v24 }
 0x1f3   :  { %v548_v33 = vrot.slane %v547_v28, 4  ;;  %v554_v34 = vadd.f32 %v532_v29, %v528_v27 }
 0x1f4   :  { %v535_v35 = vadd.f32 %v534_v31, %v533_v25  ;;  %v541_v36 = vrot.slane %v540_v32, 4 }
 0x1f5   :  { %v549_v38 = vadd.f32 %v548_v33, %v547_v28  ;;  %v555_v39 = vrot.slane %v554_v34, 4 }
 0x1f6   :  { %v536_v41 = vrot.slane %v535_v35, 2  ;;  %v542_v42 = vadd.f32 %v541_v36, %v540_v32 }
 0x1f7   :  { %v550_v43 = vrot.slane %v549_v38, 2  ;;  %v556_v44 = vadd.f32 %v555_v39, %v554_v34 }
 0x1f8   :  { %v537_v47 = vadd.f32 %v536_v41, %v535_v35  ;;  %v543_v48 = vrot.slane %v542_v42, 2 }
 0x1f9   :  { %v551_v49 = vadd.f32 %v550_v43, %v549_v38  ;;  %v557_v20 = vrot.slane %v556_v44, 2 }
 0x1fa   :  { %v538_v55 = vrot.slane %v537_v47, 1  ;;  %v544_v58 = vadd.f32 %v543_v48, %v542_v42 }
 0x1fb   :  { %v552_v61 = vrot.slane %v551_v49, 1  ;;  %v558_v62 = vadd.f32 %v557_v20, %v556_v44 }
 0x1fc   :  { %v539_v63 = vadd.f32 %v538_v55, %v537_v47  ;;  %v545_v0 = vrot.slane %v544_v58, 1 }
 0x1fd   :  { %v553_v1 = vadd.f32 %v552_v61, %v551_v49  ;;  %v559_v2 = vrot.slane %v558_v62, 1 }
 0x1fe   :  { %v546_v4 = vadd.f32 %v545_v0, %v544_v58  ;;  %v571_v56 = vadd.f32 %v570_v3, %v539_v63 }
 0x1ff   :  { %v560_v5 = vadd.f32 %v559_v2, %v558_v62  ;;  %v573_v9 = vadd.f32 %v570_v3, %v553_v1 }
 0x200   :  { %v572_v7 = vadd.f32 %v570_v3, %v546_v4 }
 0x201   :  { %v574_v10 = vadd.f32 %v570_v3, %v560_v5 }
 0x202   :  { %v579_v11 = vcombine.low %v571_v56, %v572_v7 }
 0x203   :  { %v580_v12 = vcombine.low %v573_v9, %v574_v10 }
 0x204   :  { %v587_v13 = vrot.slane %v579_v11, %v2015_v6 }
 0x205   :  { %v594_v14 = vrot.slane %v580_v12, %v2015_v6 }
 0x207   :  { %v595_v15 = vcombine.low %v587_v13, %v594_v14 }
 0x209   :  { %v602_v17 = vrot.slane %v595_v15, %v2015_v6 }
 0x20b   :  { %608 = vst.msk [vmem:[#allocation3] sm:$0xf] %vm2019_vm1, %v602_v17  ;;  %v1403_v17 = vld [vmem:[%s2072_s3] sm:$0xff]   ;;  %s1428_s3 = smov [#allocation3]  }
 0x20c   :  { %s1191_s24 = sshll.u32 %s1428_s3, 4  ;;  %s1192_s24 = int_to_ptr.vmem [resolvable:$true] %s1191_s24 }
 0x20d   :  { %s1404_s25 = scalar_lea.vmem %s1192_s24, 128  ;;  %p1409_p1 = scmp.lt.s32.totalorder %s1192_s24, %s1192_s24 }
 0x20e   :  { %p1405_p0 = scmp.ne.s32.totalorder %s1192_s24, %s1404_s25  ;;  %p1410_p2 = scmp.lt.s32.totalorder %s1404_s25, %s1404_s25 }
 0x210   :  { %p1411_p3 = por %p1410_p2, %p1409_p1 }
 0x212   :  { %p1412_p4 = pnand %p1411_p3, %p1405_p0 }
 0x225   :  { %v880_v18 = vpop.f32.mrf.mxu0 }
 0x226   :  { %v933_v19 = vpop.f32.mrf.mxu1  ;;  %v881_v32 = vadd.f32 %v880_v18, %v1999_v52 }
 0x227   :  { %v882_v21 = vpop.f32.mrf.mxu0 }
 0x228   :  { %v935_v22 = vpop.f32.mrf.mxu1  ;;  %v883_v44 = vadd.f32 %v882_v21, %v1999_v52  ;;  %v952_v12 = vmax.f32 %v881_v32, 0.0 }
 0x229   :  { %v884_v23 = vpop.f32.mrf.mxu0  ;;  %v936_v45 = vadd.f32 %v935_v22, %v1999_v52 }
 0x22a   :  { %v937_v24 = vpop.f32.mrf.mxu1  ;;  %v885_v49 = vadd.f32 %v884_v23, %v2001_v53  ;;  %v953_v3 = vmax.f32 %v883_v44, 0.0 }
 0x22b   :  { %v886_v25 = vpop.f32.mrf.mxu0  ;;  %v938_v20 = vadd.f32 %v937_v24, %v2001_v53  ;;  %v955_v56 = vmax.f32 %v936_v45, 0.0 }
 0x22c   :  { %v939_v26 = vpop.f32.mrf.mxu1  ;;  %v887_v33 = vadd.f32 %v886_v25, %v2001_v53  ;;  %v956_v7 = vmax.f32 %v885_v49, 0.0 }
 0x22d   :  { %v890_v27 = vpop.f32.mrf.mxu0  ;;  %v940_v38 = vadd.f32 %v939_v26, %v2001_v53  ;;  %v958_v10 = vmax.f32 %v938_v20, 0.0 }
 0x22e   :  { %v943_v28 = vpop.f32.mrf.mxu1  ;;  %v891_v39 = vadd.f32 %v890_v27, %v1995_v50  ;;  %v957_v59 = vmax.f32 %v887_v33, 0.0  ;;  %v970_v15 = vpack.c.bf16 %v956_v7, %v952_v12 }
 0x22f   :  { %v892_v29 = vpop.f32.mrf.mxu0  ;;  %v944_v46 = vadd.f32 %v943_v28, %v1995_v50  ;;  %v959_v63 = vmax.f32 %v940_v38, 0.0 }
 0x230   :  { %v945_v30 = vpop.f32.mrf.mxu1  ;;  %v893_v34 = vadd.f32 %v892_v29, %v1995_v50  ;;  %v960_v0 = vmax.f32 %v891_v39, 0.0  ;;  %v971_v11 = vpack.c.bf16 %v957_v59, %v953_v3  ;;  %v1102_v39 = vpop.permute.xlu1 %1101 }
 0x231   :  { %v894_v31 = vpop.f32.mrf.mxu0  ;;  %v946_v41 = vadd.f32 %v945_v30, %v1995_v50  ;;  %v934_v50 = vadd.f32 %v933_v19, %v1999_v52  ;;  %v962_v4 = vmax.f32 %v944_v46, 0.0  ;;  %v973_v13 = vpack.c.bf16 %v959_v63, %v955_v56 }
 0x232   :  { %v895_v35 = vadd.f32 %v894_v31, %v1997_v51  ;;  %v947_v36 = vpop.f32.mrf.mxu1  ;;  %v961_v61 = vmax.f32 %v893_v34, 0.0 }
 0x233   :  { %v948_v42 = vadd.f32 %v947_v36, %v1997_v51  ;;  %v896_v43 = vpop.f32.mrf.mxu0  ;;  %v963_v1 = vmax.f32 %v946_v41, 0.0  ;;  %v954_v14 = vmax.f32 %v934_v50, 0.0 }
 0x234   :  { %v897_v47 = vadd.f32 %v896_v43, %v1997_v51  ;;  %v949_v48 = vpop.f32.mrf.mxu1  ;;  %v964_v55 = vmax.f32 %v895_v35, 0.0 }
 0x235   :  { %v950_v58 = vadd.f32 %v949_v48, %v1997_v51  ;;  %v966_v62 = vmax.f32 %v948_v42, 0.0  ;;  %v972_v52 = vpack.c.bf16 %v958_v10, %v954_v14 }
 0x236   :  { %v965_v8 = vmax.f32 %v897_v47, 0.0  ;;  %v974_v9 = vpack.c.bf16 %v964_v55, %v960_v0 }
 0x237   :  { %v967_v2 = vmax.f32 %v950_v58, 0.0  ;;  %v976_v51 = vpack.c.bf16 %v966_v62, %v962_v4 }
 0x238   :  { %v975_v5 = vpack.c.bf16 %v965_v8, %v961_v61 }
 0x239   :  { %v977_v53 = vpack.c.bf16 %v967_v2, %v963_v1 }
 0x23a   :  { %1010 = vmatprep.subr.bf16.mxu0 %v975_v5 }
 0x23b   :  { %1053 = vmatprep.subr.bf16.mxu1 %v977_v53  ;;  %1011 = vmatpush1.bf16.msra.mxu0 %v974_v9 }
 0x23c   :  { %1054 = vmatpush1.bf16.msra.mxu1 %v976_v51  ;;  %1012 = vmatprep.subr.bf16.mxu0 %v971_v11  ;;  %v1144_v51 = vpop.permute.xlu1 %1143 }
 0x23d   :  { %1055 = vmatprep.subr.bf16.mxu1 %v973_v13 }
 0x23f   :  { %1013 = vmatpush1.bf16.msra.mxu0 %v970_v15 }
 0x240   :  { %1056 = vmatpush1.bf16.msra.mxu1 %v972_v52 }
 0x242   :  { %1279 = vmatmul.mubr.msk.bf16.vlgmr.msra.gmra.mxu0 %vm164_vm0, %v1403_v17 }
 0x243   :  { %1280 = vmatmul.mubr.msk.bf16.vlgmr.msra.gmra.mxu1 %vm164_vm0, %v1403_v17 }
 0x302   :  { %v1032_v18 = vpop.f32.mrf.mxu0 }
 0x303   :  { %v1033_v19 = vadd.f32 %v1032_v18, %v2003_v57  ;;  %v1075_v21 = vpop.f32.mrf.mxu1  ;;  %v1149_v18 = vrot.slane %v1144_v51, %v569_v54 }
 0x304   :  { %v1076_v22 = vadd.f32 %v1075_v21, %v2003_v57  ;;  %v1034_v23 = vpop.f32.mrf.mxu0 }
 0x305   :  { %v1035_v24 = vadd.f32 %v1034_v23, %v2003_v57  ;;  %v1077_v25 = vpop.f32.mrf.mxu1  ;;  %v1084_v28 = vmax.f32 %v1033_v19, 0.0 }
 0x306   :  { %v1078_v26 = vadd.f32 %v1077_v25, %v2003_v57  ;;  %v1036_v27 = vpop.f32.mrf.mxu0  ;;  %v1086_v31 = vmax.f32 %v1076_v22, 0.0 }
 0x307   :  { %v1037_v29 = vadd.f32 %v1036_v27, %v2005_v60  ;;  %v1079_v30 = vpop.f32.mrf.mxu1  ;;  %v1085_v34 = vmax.f32 %v1035_v24, 0.0  ;;  %v1104_v57 = vmul.f32 %v2007_v37, %v1084_v28 }
 0x308   :  { %v1080_v32 = vadd.f32 %v1079_v30, %v2005_v60  ;;  %v1038_v33 = vpop.f32.mrf.mxu0  ;;  %v1087_v41 = vmax.f32 %v1078_v26, 0.0  ;;  %v1106_v46 = vmul.f32 %v2007_v37, %v1086_v31 }
 0x309   :  { %v1088_v35 = vmax.f32 %v1037_v29, 0.0  ;;  %v1039_v36 = vadd.f32 %v1038_v33, %v2005_v60  ;;  %v1081_v38 = vpop.f32.mrf.mxu1  ;;  %v1105_v49 = vmul.f32 %v2007_v37, %v1085_v34 }
 0x30a   :  { %v1090_v42 = vmax.f32 %v1080_v32, 0.0  ;;  %v1082_v43 = vadd.f32 %v1081_v38, %v2005_v60  ;;  %v1107_v58 = vmul.f32 %v2007_v37, %v1087_v41 }
 0x30b   :  { %v1108_v44 = vmul.f32 %v1102_v39, %v1088_v35  ;;  %v1089_v45 = vmax.f32 %v1039_v36, 0.0 }
 0x30c   :  { %v1110_v47 = vmul.f32 %v1102_v39, %v1090_v42  ;;  %v1091_v48 = vmax.f32 %v1082_v43, 0.0 }
 0x30d   :  { %v1112_v20 = vadd.f32 %v1108_v44, %v1104_v57  ;;  %v1109_v55 = vmul.f32 %v1102_v39, %v1089_v45 }
 0x30e   :  { %v1126_v59 = vadd.f32 %v1110_v47, %v1106_v46  ;;  %v1111_v61 = vmul.f32 %v1102_v39, %v1091_v48 }
 0x30f   :  { %v1113_v62 = vrot.slane %v1112_v20, 4  ;;  %v1119_v8 = vadd.f32 %v1109_v55, %v1105_v49 }
 0x310   :  { %v1127_v63 = vrot.slane %v1126_v59, 4  ;;  %v1133_v60 = vadd.f32 %v1111_v61, %v1107_v58 }
 0x311   :  { %v1114_v0 = vadd.f32 %v1113_v62, %v1112_v20  ;;  %v1120_v1 = vrot.slane %v1119_v8, 4 }
 0x312   :  { %v1128_v2 = vadd.f32 %v1127_v63, %v1126_v59  ;;  %v1134_v50 = vrot.slane %v1133_v60, 4 }
 0x313   :  { %v1115_v3 = vrot.slane %v1114_v0, 2  ;;  %v1121_v4 = vadd.f32 %v1120_v1, %v1119_v8 }
 0x314   :  { %v1129_v5 = vrot.slane %v1128_v2, 2  ;;  %v1135_v56 = vadd.f32 %v1134_v50, %v1133_v60 }
 0x315   :  { %v1116_v7 = vadd.f32 %v1115_v3, %v1114_v0  ;;  %v1122_v9 = vrot.slane %v1121_v4, 2 }
 0x316   :  { %v1130_v53 = vadd.f32 %v1129_v5, %v1128_v2  ;;  %v1136_v10 = vrot.slane %v1135_v56, 2 }
 0x317   :  { %v1117_v11 = vrot.slane %v1116_v7, 1  ;;  %v1123_v37 = vadd.f32 %v1122_v9, %v1121_v4 }
 0x318   :  { %v1131_v12 = vrot.slane %v1130_v53, 1  ;;  %v1137_v13 = vadd.f32 %v1136_v10, %v1135_v56 }
 0x319   :  { %v1118_v14 = vadd.f32 %v1117_v11, %v1116_v7  ;;  %v1124_v15 = vrot.slane %v1123_v37, 1 }
 0x31a   :  { %v1132_v52 = vadd.f32 %v1131_v12, %v1130_v53  ;;  %v1138_v17 = vrot.slane %v1137_v13, 1 }
 0x31b   :  { %v1125_v19 = vadd.f32 %v1124_v15, %v1123_v37  ;;  %v1150_v22 = vadd.f32 %v1149_v18, %v1118_v14 }
 0x31c   :  { %v1139_v21 = vadd.f32 %v1138_v17, %v1137_v13  ;;  %v1152_v24 = vadd.f32 %v1149_v18, %v1132_v52 }
 0x31d   :  { %v1151_v23 = vadd.f32 %v1149_v18, %v1125_v19 }
 0x31e   :  { %v1153_v25 = vadd.f32 %v1149_v18, %v1139_v21 }
 0x31f   :  { %v1158_v26 = vcombine.low %v1150_v22, %v1151_v23 }
 0x320   :  { %v1159_v27 = vcombine.low %v1152_v24, %v1153_v25 }
 0x321   :  { %v1166_v28 = vrot.slane %v1158_v26, %v2015_v6 }
 0x322   :  { %v1173_v29 = vrot.slane %v1159_v27, %v2015_v6 }
 0x324   :  { %v1174_v30 = vcombine.low %v1166_v28, %v1173_v29 }
 0x326   :  { %v1181_v31 = vrot.slane %v1174_v30, %v2015_v6 }
 0x328   :  { %1184 = vst.msk [vmem:[#allocation3 + $0x4] sm:$0xf] %vm2019_vm1, %v1181_v31 }
 0x329   :  { %1415 = shalt.err (!%p1412_p4)
}
 0x32a   :  { %1194 = dma.vmem_to_hbm [thread:$0]  %s1192_s24, 128, %s2076_s7, [#allocation4]  }
 0x32b   :  { %1424 = dma.done.wait [#allocation4], 128  }
 0x32c   :  { %1425 = vsyncadd [#allocation4], 4294967168 }
 0x32d   :  { %1198 = vsyncpa [#allocation4], 1 }

</bundles_post_ra>
